<compile_context>
chip_gen: v7x
topology: tpu7x:2x2x1
jax: 0.10.0
libtpu: 0.0.40
codegen_flags: <defaults>
</compile_context>

<pallas_src>
import jax
import jax.numpy as jnp
from jax.experimental import pallas as pl
from jax.experimental.pallas import tpu as pltpu

DROPOUT_P = 0.05
LEAKY_SLOPE = 0.01            # torch.nn.LeakyReLU default negative_slope

PARAM_ROWS, PARAM_COLS = 40, 24   # packed parameter slab
MASK_ROWS = 64                    # packed dropout-mask slab (rows 0:20 / 24:44 / 48:58)
MAX_BATCH_BLOCK = 512             # per-grid-step batch tile when B is large


def mlp_kernel(x_ref, p_ref, m_ref, o_ref):
    x = x_ref[...]                          # (1, TB)  batch on the lane axis

    # --- packed parameter slab (static slices) -----------------------------
    w2 = p_ref[0:20, 0:20]                  # (20, 20)  keep-scale folded in
    b2 = p_ref[0:20, 20:21]                 # (20, 1)
    w1 = p_ref[0:20, 21:22]                 # (20, 1)
    b1 = p_ref[0:20, 22:23]                 # (20, 1)
    w3 = p_ref[24:34, 0:20]                 # (10, 20)  keep-scale folded in
    b3 = p_ref[24:34, 20:21]                # (10, 1)
    w4 = p_ref[24:34, 21:22]                # (10, 1)   keep-scale folded in
    b4 = p_ref[32:33, 22:23]                # (1, 1)

    # Layer 1: Linear(1, 20) + ReLU.  K=1 contraction is an outer product;
    # keep it on the VPU (broadcast multiply), no MXU round trip.
    h = jnp.maximum(w1 * x + b1, 0.0)                       # (20, TB)
    h = h * m_ref[0:20, :]                                  # dropout (scale folded into w2)

    # Layer 2: Linear(20, 20) + ReLU on the MXU.
    h = jnp.dot(w2, h, preferred_element_type=jnp.float32) + b2
    h = jnp.maximum(h, 0.0)
    h = h * m_ref[24:44, :]                                 # dropout (scale folded into w3)

    # Layer 3: Linear(20, 10) + LeakyReLU on the MXU.
    h = jnp.dot(w3, h, preferred_element_type=jnp.float32) + b3
    h = jnp.where(h >= 0.0, h, LEAKY_SLOPE * h)
    h = h * m_ref[48:58, :]                                 # dropout (scale folded into w4)

    # Layer 4: Linear(10, 1).  N=1 output: VPU multiply + sublane reduce
    # instead of a 1-wide MXU matmul; result (1, TB) is lane-dense.
    o_ref[...] = jnp.sum(w4 * h, axis=0, keepdims=True) + b4


def _tpu_compiler_params():
    cls = getattr(pltpu, "CompilerParams", None) or getattr(pltpu, "TPUCompilerParams", None)
    if cls is None:
        return None
    try:
        return cls(dimension_semantics=("parallel",))
    except TypeError:
        return None


def simple_model_forward(x, param_slab, dropout_masks):
    """x: (B,) or (B,1) f32; param_slab: (40,24); dropout_masks: (64,B). Returns (B,1)."""
    x = jnp.asarray(x, jnp.float32).reshape(1, -1)          # (1, B): batch on lanes
    B = x.shape[1]
    tb = B if B <= MAX_BATCH_BLOCK else MAX_BATCH_BLOCK
    grid = (pl.cdiv(B, tb),)

    kwargs = {}
    cp = _tpu_compiler_params()
    if cp is not None:
        kwargs["compiler_params"] = cp

    out = pl.pallas_call(
        mlp_kernel,
        out_shape=jax.ShapeDtypeStruct((1, B), jnp.float32),
        grid=grid,
        in_specs=[
            pl.BlockSpec((1, tb), lambda i: (0, i)),                    # activations
            pl.BlockSpec((PARAM_ROWS, PARAM_COLS), lambda i: (0, 0)),   # weights (resident)
            pl.BlockSpec((MASK_ROWS, tb), lambda i: (0, i)),            # dropout keep-masks
        ],
        out_specs=pl.BlockSpec((1, tb), lambda i: (0, i)),
        **kwargs,
    )(x, param_slab, dropout_masks)
    return out.reshape(B, 1)


def init_params(key):
    """torch.nn.Linear-style init: W (out,in), b (out,), U(-1/sqrt(fan_in), 1/sqrt(fan_in))."""
    dims = [(20, 1), (20, 20), (10, 20), (1, 10)]
    params = []
    for fan_out, fan_in in dims:
        key, kw, kb = jax.random.split(key, 3)
        bound = 1.0 / float(fan_in) ** 0.5
        params.append(jax.random.uniform(kw, (fan_out, fan_in), jnp.float32, -bound, bound))
        params.append(jax.random.uniform(kb, (fan_out,), jnp.float32, -bound, bound))
    return params


def pack_params(w1, b1, w2, b2, w3, b3, w4, b4, p=DROPOUT_P):
    """Pack all layer params into one (40, 24) f32 slab (single DMA) and fold the
    inverted-dropout scale 1/(1-p) into the weight consuming each dropped activation."""
    ks = 1.0 / (1.0 - p)
    slab = jnp.zeros((PARAM_ROWS, PARAM_COLS), jnp.float32)
    slab = slab.at[0:20, 0:20].set(w2 * ks)
    slab = slab.at[0:20, 20].set(b2)
    slab = slab.at[0:20, 21].set(w1[:, 0])
    slab = slab.at[0:20, 22].set(b1)
    slab = slab.at[24:34, 0:20].set(w3 * ks)
    slab = slab.at[24:34, 20].set(b3)
    slab = slab.at[24:34, 21].set(w4[0, :] * ks)
    slab = slab.at[32, 22].set(b4[0])
    return slab


def make_dropout_masks(key, batch, p=DROPOUT_P):
    """Bernoulli(1-p) keep masks for the three dropout layers, packed into one (64, B)
    slab: rows 0:20 (after layer 1), 24:44 (after layer 2), 48:58 (after layer 3)."""
    return jax.random.bernoulli(key, 1.0 - p, (MASK_ROWS, batch)).astype(jnp.float32)


if __name__ == "__main__":
    key = jax.random.PRNGKey(0)
    key, kx, kp, km = jax.random.split(key, 4)

    B = 8
    X = jax.random.normal(kx, (B,), jnp.float32)      # SimpleModel.forward gets X[:, None]
    params = init_params(kp)
    slab = pack_params(*params)
    masks = make_dropout_masks(km, B)

    out = simple_model_forward(X[:, None], slab, masks)
    out = jax.block_until_ready(out)
    assert out.shape == (B, 1) and out.dtype == jnp.float32
    print("KERNEL_OK")
</pallas_src>

<mosaic_0001>
module attributes {stable_mosaic.version = 11 : i64} {
  func.func @mlp_kernel(%arg0: i32, %arg1: memref<1x8xf32, #tpu.memory_space<vmem>>, %arg2: memref<40x24xf32, #tpu.memory_space<vmem>>, %arg3: memref<64x8xf32, #tpu.memory_space<vmem>>, %arg4: memref<1x8xf32, #tpu.memory_space<vmem>>) attributes {dimension_semantics = [#tpu.dimension_semantics<parallel>], iteration_bounds = array<i64: 1>, scalar_prefetch = 0 : i64, scratch_operands = 0 : i64, tpu.core_type = #tpu.core_type<tc>, window_params = [{transform_indices = @transform_0, window_bounds = array<i64: 1, 8>}, {pipeline_mode = #tpu.pipeline_mode<synchronous>, transform_indices = @transform_1, window_bounds = array<i64: 40, 24>}, {transform_indices = @transform_2, window_bounds = array<i64: 64, 8>}, {transform_indices = @transform_3, window_bounds = array<i64: 1, 8>}]} {
    %c0 = arith.constant 0 : index
    %c0_0 = arith.constant 0 : index
    %0 = vector.load %arg1[%c0, %c0_0] : memref<1x8xf32, #tpu.memory_space<vmem>>, vector<1x8xf32>
    %c0_1 = arith.constant 0 : index
    %c0_2 = arith.constant 0 : index
    %1 = vector.load %arg2[%c0_1, %c0_2] : memref<40x24xf32, #tpu.memory_space<vmem>>, vector<20x20xf32>
    %c0_3 = arith.constant 0 : index
    %c20 = arith.constant 20 : index
    %2 = vector.load %arg2[%c0_3, %c20] : memref<40x24xf32, #tpu.memory_space<vmem>>, vector<20x1xf32>
    %c0_4 = arith.constant 0 : index
    %c21 = arith.constant 21 : index
    %3 = vector.load %arg2[%c0_4, %c21] : memref<40x24xf32, #tpu.memory_space<vmem>>, vector<20x1xf32>
    %c0_5 = arith.constant 0 : index
    %c22 = arith.constant 22 : index
    %4 = vector.load %arg2[%c0_5, %c22] : memref<40x24xf32, #tpu.memory_space<vmem>>, vector<20x1xf32>
    %c24 = arith.constant 24 : index
    %c0_6 = arith.constant 0 : index
    %5 = vector.load %arg2[%c24, %c0_6] : memref<40x24xf32, #tpu.memory_space<vmem>>, vector<10x20xf32>
    %c24_7 = arith.constant 24 : index
    %c20_8 = arith.constant 20 : index
    %6 = vector.load %arg2[%c24_7, %c20_8] : memref<40x24xf32, #tpu.memory_space<vmem>>, vector<10x1xf32>
    %c24_9 = arith.constant 24 : index
    %c21_10 = arith.constant 21 : index
    %7 = vector.load %arg2[%c24_9, %c21_10] : memref<40x24xf32, #tpu.memory_space<vmem>>, vector<10x1xf32>
    %c32 = arith.constant 32 : index
    %c22_11 = arith.constant 22 : index
    %8 = vector.load %arg2[%c32, %c22_11] : memref<40x24xf32, #tpu.memory_space<vmem>>, vector<1x1xf32>
    %9 = vector.broadcast %3 : vector<20x1xf32> to vector<20x8xf32>
    %10 = vector.broadcast %0 : vector<1x8xf32> to vector<20x8xf32>
    %11 = arith.mulf %9, %10 : vector<20x8xf32>
    %12 = vector.broadcast %4 : vector<20x1xf32> to vector<20x8xf32>
    %13 = arith.addf %11, %12 : vector<20x8xf32>
    %cst = arith.constant 0.000000e+00 : f32
    %14 = vector.broadcast %cst : f32 to vector<20x8xf32>
    %15 = arith.maximumf %13, %14 : vector<20x8xf32>
    %c0_12 = arith.constant 0 : index
    %c0_13 = arith.constant 0 : index
    %16 = vector.load %arg3[%c0_12, %c0_13] : memref<64x8xf32, #tpu.memory_space<vmem>>, vector<20x8xf32>
    %17 = arith.mulf %15, %16 : vector<20x8xf32>
    %cst_14 = arith.constant dense<0.000000e+00> : vector<20x8xf32>
    %18 = tpu.matmul %1, %17, %cst_14 {dimension_numbers = #tpu.dot_dimension_numbers<[1], [0], [0], [1], [0, 0, 1, 1], [], []>} : vector<20x20xf32>, vector<20x8xf32>, vector<20x8xf32> -> vector<20x8xf32>
    %19 = vector.broadcast %2 : vector<20x1xf32> to vector<20x8xf32>
    %20 = arith.addf %18, %19 : vector<20x8xf32>
    %cst_15 = arith.constant 0.000000e+00 : f32
    %21 = vector.broadcast %cst_15 : f32 to vector<20x8xf32>
    %22 = arith.maximumf %20, %21 : vector<20x8xf32>
    %c24_16 = arith.constant 24 : index
    %c0_17 = arith.constant 0 : index
    %23 = vector.load %arg3[%c24_16, %c0_17] : memref<64x8xf32, #tpu.memory_space<vmem>>, vector<20x8xf32>
    %24 = arith.mulf %22, %23 : vector<20x8xf32>
    %cst_18 = arith.constant dense<0.000000e+00> : vector<10x8xf32>
    %25 = tpu.matmul %5, %24, %cst_18 {dimension_numbers = #tpu.dot_dimension_numbers<[1], [0], [0], [1], [0, 0, 1, 1], [], []>} : vector<10x20xf32>, vector<20x8xf32>, vector<10x8xf32> -> vector<10x8xf32>
    %26 = vector.broadcast %6 : vector<10x1xf32> to vector<10x8xf32>
    %27 = arith.addf %25, %26 : vector<10x8xf32>
    %cst_19 = arith.constant 0.000000e+00 : f32
    %28 = vector.broadcast %cst_19 : f32 to vector<10x8xf32>
    %29 = arith.cmpf oge, %27, %28 : vector<10x8xf32>
    %cst_20 = arith.constant 0.00999999977 : f32
    %30 = vector.broadcast %cst_20 : f32 to vector<10x8xf32>
    %31 = arith.mulf %30, %27 : vector<10x8xf32>
    %32 = arith.select %29, %27, %31 : vector<10x8xi1>, vector<10x8xf32>
    %c48 = arith.constant 48 : index
    %c0_21 = arith.constant 0 : index
    %33 = vector.load %arg3[%c48, %c0_21] : memref<64x8xf32, #tpu.memory_space<vmem>>, vector<10x8xf32>
    %34 = arith.mulf %32, %33 : vector<10x8xf32>
    %35 = vector.broadcast %7 : vector<10x1xf32> to vector<10x8xf32>
    %36 = arith.mulf %35, %34 : vector<10x8xf32>
    %cst_22 = arith.constant dense<0.000000e+00> : vector<8xf32>
    %37 = vector.multi_reduction <add>, %36, %cst_22 [0] : vector<10x8xf32> to vector<8xf32>
    %38 = vector.shape_cast %37 : vector<8xf32> to vector<1x8xf32>
    %39 = vector.broadcast %8 : vector<1x1xf32> to vector<1x8xf32>
    %40 = arith.addf %38, %39 : vector<1x8xf32>
    %c0_23 = arith.constant 0 : index
    %c0_24 = arith.constant 0 : index
    %41 = vector.load %arg4[%c0_23, %c0_24] : memref<1x8xf32, #tpu.memory_space<vmem>>, vector<1x8xf32>
    tpu.vector_store %arg4[%c0_23, %c0_24], %40 {strides = array<i32>} : memref<1x8xf32, #tpu.memory_space<vmem>>, vector<1x8xf32>,
    return
  }
  func.func @transform_0(%arg0: i32) -> (i32, i32) {
    %c0_i32 = arith.constant 0 : i32
    %c0_i32_0 = arith.constant 0 : i32
    return %c0_i32, %arg0 : i32, i32
  }
  func.func @transform_1(%arg0: i32) -> (i32, i32) {
    %c0_i32 = arith.constant 0 : i32
    %c0_i32_0 = arith.constant 0 : i32
    %c0_i32_1 = arith.constant 0 : i32
    return %c0_i32, %c0_i32_0 : i32, i32
  }
  func.func @transform_2(%arg0: i32) -> (i32, i32) {
    %c0_i32 = arith.constant 0 : i32
    %c0_i32_0 = arith.constant 0 : i32
    return %c0_i32, %arg0 : i32, i32
  }
  func.func @transform_3(%arg0: i32) -> (i32, i32) {
    %c0_i32 = arith.constant 0 : i32
    %c0_i32_0 = arith.constant 0 : i32
    return %c0_i32, %arg0 : i32, i32
  }
}

</mosaic_0001>

<bundles_post_ra>
// kernel: tpu_custom_call.1
= control target key start
LH: loop header
LB: loop body
LE: loop exit
PB: predicated region body
PF: predicated region fallthrough
CT: control target
= control target key end

     0   :  { %v416_v1 = vmov 22   ;;  %v417_v2 = vmov 21   ;;  %s522_s0 = inlined_call_operand.vmem [shape: f32[1,8], index: 0, kind: input, shape index: {}]   ;;  %s523_s1 = inlined_call_operand.vmem [shape: f32[40,24], index: 1, kind: input, shape index: {}]   ;;  %s524_s2 = inlined_call_operand.vmem [shape: f32[64,8], index: 2, kind: input, shape index: {}]   ;;  %s525_s3 = inlined_call_operand.hbm [shape: f32[1,8], index: 3, kind: output, shape index: {}]  }
   0x1   :  { %v446_v0 = vld [vmem:[%s523_s1] sm:$0xff]  ;;  %385 = vset.pattern.permute.xlu1 %v416_v1  ;;  %384 = vset.pattern.permute.xlu0 %v417_v2 }
   0x2   :  { %8 = vsyncpa [#allocation3], 0  ;;  %47 = vperm.xlu1 %385, %v446_v0   ;;  %24 = vperm.xlu0 %384, %v446_v0   ;;  %v17_v3 = vld [vmem:[%s523_s1 + $0x8] sm:$0xff]  ;;  %v18_v4 = vld [vmem:[%s523_s1 + $0x10] sm:$0xf]  ;;  %v418_v5 = vmov 0.0|0.0  }
   0x3   :  { %370 = vmatprep.subr.bf16.mxu0 %v418_v5  ;;  %vm419_vm0 = vmmov 0   ;;  %v420_v6 = vmov 0.0   ;;  %v421_v7 = vmov 20   ;;  %vm82_vm1 = vcmask 162816   ;;  %v19_v8 = vld [vmem:[%s523_s1 + $0x18] sm:$0xff]  ;;  %v64_v21 = vld [vmem:[%s524_s2] sm:$0xff] }
   0x4   :  { %352 = vmatprep.mubr.msk.f32.mxu0 %vm419_vm0, %v420_v6  ;;  %367 = vmatprep.mubr.msk.f32.mxu1 %vm82_vm1, %v19_v8  ;;  %v465_v9 = vld [vmem:[%s523_s1 + $0x20] sm:$0x3]  ;;  %v65_v22 = vld [vmem:[%s524_s2 + $0x8] sm:$0xff]  ;;  %v66_v31 = vld [vmem:[%s524_s2 + $0x10] sm:$0xf]  ;;  %vm89_vm2 = vcmask 1043456  }
   0x5   :  { %v327_v10 = vld [vmem:[%s522_s0] ss:$0 sm:$0xff]  ;;  %v176_v43 = vld [vmem:[%s524_s2 + $0x18] sm:$0xff]  ;;  %v178_v52 = vld [vmem:[%s524_s2 + $0x28] sm:$0xf]  ;;  %vm296_vm5 = vcmask 58368  }
   0x6   :  { %51 = vperm.xlu1 %385, %v17_v3   ;;  %29 = vperm.xlu0 %384, %v17_v3   ;;  %v21_v33 = vld [vmem:[%s523_s1 + $0x20] sm:$0x1]  ;;  %v281_v63 = vld [vmem:[%s524_s2 + $0x38] sm:$0x3]  ;;  %vm294_vm6 = vcmask 64512   ;;  %vm311_vm7 = vcmask 57344  }
   0x7   :  { %v177_v44 = vld [vmem:[%s524_s2 + $0x20] sm:$0xff] }
   0xa   :  { %55 = vperm.xlu1 %385, %v18_v4   ;;  %34 = vperm.xlu0 %384, %v18_v4  }
   0xe   :  { %387 = vset.pattern.permute.xlu1 %v421_v7  ;;  %386 = vset.pattern.permute.xlu0 %v421_v7 }
   0xf   :  { %75 = vperm.xlu1 %387, %v17_v3   ;;  %71 = vperm.xlu0 %386, %v446_v0  }
  0x13   :  { %79 = vperm.xlu1 %387, %v18_v4   ;;  %184 = vperm.xlu0 %386, %v19_v8  }
  0x17   :  { %189 = vperm.xlu1 %387, %v465_v9   ;;  %388 = vset.pattern.permute.xlu0 %v417_v2 }
  0x18   :  { %285 = vperm.xlu0 %388, %v19_v8  }
  0x1b   :  { %389 = vset.pattern.permute.xlu1 %v417_v2 }
  0x1c   :  { %289 = vperm.xlu1 %389, %v465_v9   ;;  %391 = vset.pattern.permute.xlu0 %v416_v1 }
  0x20   :  { %390 = vset.pattern.permute.xlu1 %v416_v1  ;;  %v280_v1 = vld [vmem:[%s524_s2 + $0x30] sm:$0xff]  ;;  %s422_s2 = smov [#allocation2]  }
  0x21   :  { %307 = vperm.xlu1 %390, %v21_v33   ;;  %s319_s13 = sshll.u32 %s422_s2, 4  ;;  %s320_s13 = int_to_ptr.vmem [resolvable:$true] %s319_s13 }
  0x22   :  { %s392_s14 = scalar_lea.vmem %s320_s13, 16  ;;  %s396_s15 = scalar_lea.vmem %s320_s13, 32 }
  0x23   :  { %p393_p0 = scmp.ne.s32.totalorder %s320_s13, %s392_s14  ;;  %p397_p1 = scmp.lt.s32.totalorder %s320_s13, %s320_s13 }
  0x24   :  { %p398_p2 = scmp.lt.s32.totalorder %s396_s15, %s392_s14 }
  0x26   :  { %p399_p3 = por %p398_p2, %p397_p1 }
  0x28   :  { %p400_p4 = pnand %p399_p3, %p393_p0 }
  0x81   :  { %v48_v11 = vpop.permute.xlu1 %47  ;;  %v25_v12 = vpop.permute.xlu0 %24 }
  0x82   :  { %v43_v13 = vmul.f32 %v327_v10, %v25_v12 }
  0x84   :  { %v58_v14 = vadd.f32 %v48_v11, %v43_v13 }
  0x85   :  { %v52_v15 = vpop.permute.xlu1 %51  ;;  %v30_v16 = vpop.permute.xlu0 %29 }
  0x86   :  { %v44_v17 = vmul.f32 %v327_v10, %v30_v16  ;;  %v61_v18 = vmax.f32 %v58_v14, 0.0 }
  0x88   :  { %v59_v19 = vadd.f32 %v52_v15, %v44_v17  ;;  %v67_v27 = vmul.f32 %v64_v21, %v61_v18 }
  0x89   :  { %v35_v20 = vpop.permute.xlu0 %34  ;;  %v56_v25 = vpop.permute.xlu1 %55 }
  0x8a   :  { %v62_v23 = vmax.f32 %v59_v19, 0.0  ;;  %v45_v24 = vmul.f32 %v327_v10, %v35_v20 }
  0x8c   :  { %v60_v26 = vadd.f32 %v56_v25, %v45_v24  ;;  %v68_v28 = vmul.f32 %v65_v22, %v62_v23 }
  0x8e   :  { %v63_v29 = vmax.f32 %v60_v26, 0.0  ;;  %v371_v30 = vpack.c.bf16 %v68_v28, %v67_v27  ;;  %v72_v34 = vpop.permute.xlu0 %71  ;;  %v76_v38 = vpop.permute.xlu1 %75 }
  0x90   :  { %372 = vmatpush3.bf16.msra.mxu0 %v371_v30  ;;  %v69_v32 = vmul.f32 %v66_v31, %v63_v29 }
  0x91   :  { %350 = vmatprep.subr.mxu0 %v420_v6 }
  0x92   :  { %v80_v46 = vpop.permute.xlu1 %79  ;;  %v185_v58 = vpop.permute.xlu0 %184 }
  0x94   :  { %351 = vmatpush3.msk.msra.mxu0 %vm89_vm2, %v69_v32 }
  0x95   :  { %353 = vmatmul.mubr.msk.f32.vlgmr.msra.gmra.mrb[0].mxu0 %vm82_vm1, %v446_v0 }
  0x96   :  { %355 = vmatprep.mubr.msk.f32.mxu0 %vm419_vm0, %v420_v6  ;;  %v190_v56 = vpop.permute.xlu1 %189 }
  0x97   :  { %v286_v5 = vpop.permute.xlu0 %285 }
  0x99   :  { %356 = vmatmul.mubr.msk.f32.gmra.mrb[2].mxu0 %vm82_vm1, %v17_v3 }
  0x9a   :  { %358 = vmatprep.mubr.msk.f32.mxu0 %vm419_vm0, %v420_v6 }
  0x9b   :  { %v290_v2 = vpop.permute.xlu1 %289 }
  0x9d   :  { %359 = vmatmul.mubr.msk.f32.gmra.mrb[4].mxu0 %vm82_vm1, %v18_v4 }
  0xa0   :  { %v308_v18 = vpop.permute.xlu1 %307 }
 0x168   :  { %v159_v35 = vpop.f32.mrb[0].mxu0 }
 0x169   :  { %v160_v36 = vadd.f32 %v159_v35, %v72_v34  ;;  %v354_v37 = vpop.f32.mrb[1].mxu0 }
 0x16b   :  { %v173_v40 = vmax.f32 %v160_v36, 0.0 }
 0x16c   :  { %v164_v39 = vpop.f32.mrb[2].mxu0 }
 0x16d   :  { %v165_v41 = vadd.f32 %v164_v39, %v76_v38  ;;  %v357_v42 = vpop.f32.mrb[3].mxu0  ;;  %v179_v48 = vmul.f32 %v176_v43, %v173_v40 }
 0x16f   :  { %v174_v45 = vmax.f32 %v165_v41, 0.0 }
 0x170   :  { %v169_v47 = vpop.f32.mrb[4].mxu0 }
 0x171   :  { %v180_v49 = vmul.f32 %v177_v44, %v174_v45  ;;  %v170_v50 = vadd.f32 %v169_v47, %v80_v46  ;;  %v360_v51 = vpop.f32.mrb[5].mxu0 }
 0x173   :  { %v175_v53 = vmax.f32 %v170_v50, 0.0  ;;  %v373_v54 = vpack.c.bf16 %v180_v49, %v179_v48 }
 0x175   :  { %v181_v55 = vmul.f32 %v178_v52, %v175_v53  ;;  %374 = vmatprep.subr.bf16.mxu1 %v373_v54 }
 0x176   :  { %376 = vmatpush3.bf16.msra.mxu1 %v373_v54 }
 0x177   :  { %365 = vmatprep.subr.msk.mxu1 %vm89_vm2, %v181_v55 }
 0x17a   :  { %366 = vmatpush3.msk.msra.mxu1 %vm89_vm2, %v181_v55 }
 0x17b   :  { %368 = vmatmul.mubr.msk.f32.vlgmr.msra.gmra.mrb[0].mxu1 %vm82_vm1, %v465_v9 }
 0x24e   :  { %v369_v57 = vpop.f32.mrb[0].mxu1 }
 0x24f   :  { %v271_v59 = vadd.f32 %v369_v57, %v190_v56  ;;  %v265_v60 = vpop.f32.mrb[1].mxu1 }
 0x250   :  { %v266_v61 = vadd.f32 %v265_v60, %v185_v58 }
 0x251   :  { %vm275_vm3 = vcmp.ge.f32.partialorder %v271_v59, 0.0  ;;  %v277_v62 = vmul.f32 0.01, %v271_v59 }
 0x252   :  { %vm274_vm4 = vcmp.ge.f32.partialorder %v266_v61, 0.0  ;;  %v276_v0 = vmul.f32 0.01, %v266_v61 }
 0x253   :  { %v279_v3 = vsel %vm275_vm3, %v271_v59, %v277_v62 }
 0x254   :  { %v283_v4 = vmul.f32 %v281_v63, %v279_v3  ;;  %v278_v6 = vsel %vm274_vm4, %v266_v61, %v276_v0 }
 0x255   :  { %v282_v7 = vmul.f32 %v280_v1, %v278_v6 }
 0x256   :  { %v293_v8 = vmul.f32 %v290_v2, %v283_v4 }
 0x257   :  { %v292_v9 = vmul.f32 %v286_v5, %v282_v7 }
 0x258   :  { %v297_v10 = vsel %vm296_vm5, %v293_v8, 0.0 }
 0x259   :  { %v295_v11 = vsel %vm294_vm6, %v292_v9, 0.0 }
 0x25a   :  { %v298_v12 = vadd.f32 %v297_v10, %v295_v11 }
 0x25c   :  { %v299_v13 = vrot.slane %v298_v12, 4 }
 0x25e   :  { %v300_v14 = vadd.f32 %v299_v13, %v298_v12 }
 0x260   :  { %v301_v15 = vrot.slane %v300_v14, 2 }
 0x262   :  { %v302_v16 = vadd.f32 %v301_v15, %v300_v14 }
 0x264   :  { %v303_v17 = vrot.slane %v302_v16, 1 }
 0x266   :  { %v304_v19 = vadd.f32 %v303_v17, %v302_v16 }
 0x268   :  { %v310_v20 = vadd.f32 %v308_v18, %v304_v19 }
 0x26a   :  { %312 = vst.msk [vmem:[#allocation2] sm:$0x1] %vm311_vm7, %v310_v20 }
 0x26b   :  { %403 = shalt.err (!%p400_p4)
}
 0x26c   :  { %s404_s18 = scalar_lea.hbm %s525_s3, 16 }
 0x26d   :  { %p405_p5 = scmp.ne.s32.totalorder %s525_s3, %s404_s18  ;;  %p408_p6 = scmp.lt.u32.totalorder %s404_s18, %s525_s3 }
 0x26f   :  { %p410_p7 = pnand %p408_p6, %p405_p5 }
 0x271   :  { %413 = shalt.err (!%p410_p7)
}
 0x272   :  { %322 = dma.vmem_to_hbm [thread:$0]  %s320_s13, 16, %s525_s3, [#allocation3]  }
 0x273   :  { %414 = dma.done.wait [#allocation3], 16  }
 0x274   :  { %415 = vsyncadd [#allocation3], 4294967280 }
 0x275   :  { %326 = vsyncpa [#allocation3], 1 }

</bundles_post_ra>
